<compile_context>
chip_gen: v7x
topology: tpu7x:2x2x1
jax: 0.10.0
libtpu: 0.0.40
codegen_flags: <defaults>
</compile_context>

<pallas_src>
import functools

import jax
import jax.numpy as jnp
from jax.experimental import pallas as pl
from jax.experimental.pallas import tpu as pltpu

LANES = 128
MAX_BLOCK_ROWS = 2048  # 2048 x 128 f32 = 1 MiB per input per pipeline buffer


def _uncertainty_l1_kernel(mean_ref, logvar_ref, target_ref, mask_ref,
                           sum_ref, cnt_ref, *, block_rows, valid_rows):
    mean = mean_ref[...].astype(jnp.float32)
    logvar = logvar_ref[...].astype(jnp.float32)
    target = target_ref[...].astype(jnp.float32)
    mask = mask_ref[...].astype(jnp.float32)

    loss = jnp.exp(-logvar) * jnp.abs(mean - target) + logvar   # EUP exp + VPU
    masked_loss = loss * mask            # loss *= mask.float()
    cnt = jnp.trunc(mask)                # mask.int() truncation (identity for 0/1)

    # Only the trailing block can read rows past the array (undefined data);
    # emit the row-validity select only when that can actually happen.  The
    # select (not a multiply) also neutralizes any NaN/Inf produced from the
    # undefined OOB values.
    if valid_rows % block_rows != 0:
        row_idx = (pl.program_id(0) * block_rows
                   + jax.lax.broadcasted_iota(jnp.int32, (block_rows, LANES), 0))
        valid = row_idx < valid_rows
        masked_loss = jnp.where(valid, masked_loss, 0.0)
        cnt = jnp.where(valid, cnt, 0.0)

    # Fold rows -> 8 sublanes with pure VPU adds (reshape keeps (8,128) tiles).
    sub = block_rows // 8
    sum_ref[...] = jnp.sum(masked_loss.reshape(sub, 8, LANES), axis=0)
    cnt_ref[...] = jnp.sum(cnt.reshape(sub, 8, LANES), axis=0)


def uncertainty_l1_loss(mean, logvar, target, mask):
    """All inputs share the same shape (e.g. NCHW). Returns an f32 scalar."""
    assert mean.shape == logvar.shape == target.shape == mask.shape
    total = mean.size

    # Pad (only if needed) so the slab has rows that are a multiple of 8.
    tile_elems = 8 * LANES
    padded_total = pl.cdiv(total, tile_elems) * tile_elems
    rows = padded_total // LANES
    block_rows = min(MAX_BLOCK_ROWS, rows)           # always a multiple of 8
    num_blocks = pl.cdiv(rows, block_rows)

    if mask.dtype == jnp.bool_:
        mask = mask.astype(mean.dtype)

    def prep(x):
        flat = jnp.ravel(x)
        if padded_total != total:
            # Rare path (numel not a multiple of 1024); zero pad contributes
            # nothing to either the masked sum or the count.
            flat = jnp.pad(flat, (0, padded_total - total))
        return flat.reshape(rows, LANES)

    mean2, logvar2, target2, mask2 = prep(mean), prep(logvar), prep(target), prep(mask)

    in_blk = pl.BlockSpec((block_rows, LANES), lambda i: (i, 0))
    out_blk = pl.BlockSpec((8, LANES), lambda i: (i, 0))

    kernel = functools.partial(_uncertainty_l1_kernel,
                               block_rows=block_rows, valid_rows=rows)

    bytes_in = sum(x.size * x.dtype.itemsize for x in (mean2, logvar2, target2, mask2))
    bytes_out = 2 * num_blocks * 8 * LANES * 4
    cost = pl.CostEstimate(flops=7 * padded_total,
                           transcendentals=padded_total,
                           bytes_accessed=bytes_in + bytes_out)

    sums, cnts = pl.pallas_call(
        kernel,
        out_shape=(jax.ShapeDtypeStruct((num_blocks * 8, LANES), jnp.float32),
                   jax.ShapeDtypeStruct((num_blocks * 8, LANES), jnp.float32)),
        grid_spec=pltpu.PrefetchScalarGridSpec(
            num_scalar_prefetch=0,
            grid=(num_blocks,),
            in_specs=[in_blk, in_blk, in_blk, in_blk],
            out_specs=(out_blk, out_blk),
        ),
        compiler_params=pltpu.CompilerParams(
            dimension_semantics=("parallel",)),
        cost_estimate=cost,
    )(mean2, logvar2, target2, mask2)

    s = jnp.sum(sums)
    # Per-cell partial counts are small exact integers in f32 -> exact int cast.
    c = jnp.sum(cnts.astype(jnp.int32))
    denom = jnp.maximum(c, 1).astype(jnp.float32)     # guard the count==0 path
    return jnp.where(c == 0, s, s / denom)


def _reference(mean, logvar, target, mask):
    loss = jnp.exp(-logvar) * jnp.abs(mean - target) + logvar
    count = jnp.sum(mask.astype(jnp.int32))
    loss = loss * mask.astype(jnp.float32)
    return jnp.where(count == 0, jnp.sum(loss), jnp.sum(loss) / count)


if __name__ == "__main__":
    key = jax.random.PRNGKey(0)

    def make_inputs(shape, k):
        k1, k2, k3, k4 = jax.random.split(k, 4)
        mean = jax.random.normal(k1, shape, dtype=jnp.float32)
        logvar = 0.5 * jax.random.normal(k2, shape, dtype=jnp.float32)
        target = jax.random.normal(k3, shape, dtype=jnp.float32)
        mask = (jax.random.uniform(k4, shape) > 0.3).astype(jnp.float32)
        return mean, logvar, target, mask

    # Primary test: NCHW [2, 4, 16, 16] (numel multiple of 1024 -> no pad path).
    k_a, k_b = jax.random.split(key)
    mean, logvar, target, mask = make_inputs((2, 4, 16, 16), k_a)
    out = jax.block_until_ready(uncertainty_l1_loss(mean, logvar, target, mask))
    ref = _reference(mean, logvar, target, mask)
    assert jnp.allclose(out, ref, rtol=1e-5, atol=1e-5), (out, ref)

    # Non-128-divisible numel (exercises the zero-pad path).
    m2, lv2, t2, msk2 = make_inputs((2, 3, 13, 13), k_b)
    out2 = jax.block_until_ready(uncertainty_l1_loss(m2, lv2, t2, msk2))
    ref2 = _reference(m2, lv2, t2, msk2)
    assert jnp.allclose(out2, ref2, rtol=1e-5, atol=1e-5), (out2, ref2)

    # count == 0 path.
    zmask = jnp.zeros_like(mask)
    out3 = jax.block_until_ready(uncertainty_l1_loss(mean, logvar, target, zmask))
    ref3 = _reference(mean, logvar, target, zmask)
    assert jnp.allclose(out3, ref3, rtol=1e-5, atol=1e-5), (out3, ref3)

    print("KERNEL_OK")
</pallas_src>

<mosaic_0001>
module attributes {stable_mosaic.version = 11 : i64} {
  func.func @_uncertainty_l1_kernel(%arg0: i32, %arg1: memref<16x128xf32, #tpu.memory_space<vmem>>, %arg2: memref<16x128xf32, #tpu.memory_space<vmem>>, %arg3: memref<16x128xf32, #tpu.memory_space<vmem>>, %arg4: memref<16x128xf32, #tpu.memory_space<vmem>>, %arg5: memref<8x128xf32, #tpu.memory_space<vmem>>, %arg6: memref<8x128xf32, #tpu.memory_space<vmem>>) attributes {dimension_semantics = [#tpu.dimension_semantics<parallel>], iteration_bounds = array<i64: 1>, scalar_prefetch = 0 : i64, scratch_operands = 0 : i64, tpu.core_type = #tpu.core_type<tc>, window_params = [{transform_indices = @transform_0, window_bounds = array<i64: 16, 128>}, {transform_indices = @transform_1, window_bounds = array<i64: 16, 128>}, {transform_indices = @transform_2, window_bounds = array<i64: 16, 128>}, {transform_indices = @transform_3, window_bounds = array<i64: 16, 128>}, {transform_indices = @transform_4, window_bounds = array<i64: 8, 128>}, {transform_indices = @transform_5, window_bounds = array<i64: 8, 128>}]} {
    %c0 = arith.constant 0 : index
    %c0_0 = arith.constant 0 : index
    %0 = vector.load %arg1[%c0, %c0_0] : memref<16x128xf32, #tpu.memory_space<vmem>>, vector<16x128xf32>
    %c0_1 = arith.constant 0 : index
    %c0_2 = arith.constant 0 : index
    %1 = vector.load %arg2[%c0_1, %c0_2] : memref<16x128xf32, #tpu.memory_space<vmem>>, vector<16x128xf32>
    %c0_3 = arith.constant 0 : index
    %c0_4 = arith.constant 0 : index
    %2 = vector.load %arg3[%c0_3, %c0_4] : memref<16x128xf32, #tpu.memory_space<vmem>>, vector<16x128xf32>
    %c0_5 = arith.constant 0 : index
    %c0_6 = arith.constant 0 : index
    %3 = vector.load %arg4[%c0_5, %c0_6] : memref<16x128xf32, #tpu.memory_space<vmem>>, vector<16x128xf32>
    %cst = arith.constant 0.000000e+00 : f32
    %4 = vector.broadcast %cst : f32 to vector<16x128xf32>
    %5 = arith.subf %4, %1 : vector<16x128xf32>
    %6 = math.exp %5 : vector<16x128xf32>
    %7 = arith.subf %0, %2 : vector<16x128xf32>
    %8 = math.absf %7 : vector<16x128xf32>
    %9 = arith.mulf %6, %8 : vector<16x128xf32>
    %10 = arith.addf %9, %1 : vector<16x128xf32>
    %11 = arith.mulf %10, %3 : vector<16x128xf32>
    %cst_7 = arith.constant 0.000000e+00 : f32
    %12 = vector.broadcast %cst_7 : f32 to vector<16x128xf32>
    %13 = arith.cmpf olt, %3, %12 : vector<16x128xf32>
    %14 = math.ceil %3 : vector<16x128xf32>
    %15 = math.floor %3 : vector<16x128xf32>
    %16 = arith.select %13, %14, %15 : vector<16x128xi1>, vector<16x128xf32>
    %17 = vector.shape_cast %11 : vector<16x128xf32> to vector<2x8x128xf32>
    %cst_8 = arith.constant dense<0.000000e+00> : vector<8x128xf32>
    %18 = vector.multi_reduction <add>, %17, %cst_8 [0] : vector<2x8x128xf32> to vector<8x128xf32>
    %c0_9 = arith.constant 0 : index
    %c0_10 = arith.constant 0 : index
    %19 = vector.load %arg5[%c0_9, %c0_10] : memref<8x128xf32, #tpu.memory_space<vmem>>, vector<8x128xf32>
    tpu.vector_store %arg5[%c0_9, %c0_10], %18 {strides = array<i32>} : memref<8x128xf32, #tpu.memory_space<vmem>>, vector<8x128xf32>,
    %20 = vector.shape_cast %16 : vector<16x128xf32> to vector<2x8x128xf32>
    %cst_11 = arith.constant dense<0.000000e+00> : vector<8x128xf32>
    %21 = vector.multi_reduction <add>, %20, %cst_11 [0] : vector<2x8x128xf32> to vector<8x128xf32>
    %c0_12 = arith.constant 0 : index
    %c0_13 = arith.constant 0 : index
    %22 = vector.load %arg6[%c0_12, %c0_13] : memref<8x128xf32, #tpu.memory_space<vmem>>, vector<8x128xf32>
    tpu.vector_store %arg6[%c0_12, %c0_13], %21 {strides = array<i32>} : memref<8x128xf32, #tpu.memory_space<vmem>>, vector<8x128xf32>,
    return
  }
  func.func @transform_0(%arg0: i32) -> (i32, i32) {
    %c0_i32 = arith.constant 0 : i32
    %c0_i32_0 = arith.constant 0 : i32
    return %arg0, %c0_i32 : i32, i32
  }
  func.func @transform_1(%arg0: i32) -> (i32, i32) {
    %c0_i32 = arith.constant 0 : i32
    %c0_i32_0 = arith.constant 0 : i32
    return %arg0, %c0_i32 : i32, i32
  }
  func.func @transform_2(%arg0: i32) -> (i32, i32) {
    %c0_i32 = arith.constant 0 : i32
    %c0_i32_0 = arith.constant 0 : i32
    return %arg0, %c0_i32 : i32, i32
  }
  func.func @transform_3(%arg0: i32) -> (i32, i32) {
    %c0_i32 = arith.constant 0 : i32
    %c0_i32_0 = arith.constant 0 : i32
    return %arg0, %c0_i32 : i32, i32
  }
  func.func @transform_4(%arg0: i32) -> (i32, i32) {
    %c0_i32 = arith.constant 0 : i32
    %c0_i32_0 = arith.constant 0 : i32
    return %arg0, %c0_i32 : i32, i32
  }
  func.func @transform_5(%arg0: i32) -> (i32, i32) {
    %c0_i32 = arith.constant 0 : i32
    %c0_i32_0 = arith.constant 0 : i32
    return %arg0, %c0_i32 : i32, i32
  }
}

</mosaic_0001>

<bundles_post_ra>
// kernel: tpu_custom_call.1
= control target key start
LH: loop header
LB: loop body
LE: loop exit
PB: predicated region body
PF: predicated region fallthrough
CT: control target
= control target key end

     0   :  { %11 = vsyncpa [#allocation3], 0  ;;  %s433_s0 = inlined_call_operand.hbm [shape: f32[16,128], index: 0, kind: input, shape index: {}]   ;;  %s434_s1 = inlined_call_operand.hbm [shape: f32[16,128], index: 1, kind: input, shape index: {}]   ;;  %s435_s2 = inlined_call_operand.hbm [shape: f32[16,128], index: 2, kind: input, shape index: {}]   ;;  %s436_s3 = inlined_call_operand.hbm [shape: f32[16,128], index: 3, kind: input, shape index: {}]   ;;  %s437_s4 = inlined_call_operand.hbm [shape: f32[8,128], index: 4, kind: output, shape index: {0}]   ;;  %s438_s5 = inlined_call_operand.hbm [shape: f32[8,128], index: 5, kind: output, shape index: {1}]  }
   0x1   :  { %12 = vsyncpa [#allocation6], 0 }
   0x2   :  { %13 = vsyncpa [#allocation9], 0 }
   0x3   :  { %14 = vsyncpa [#allocation4], 0 }
   0x4   :  { %15 = vsyncpa [#allocation12], 0  ;;  %s297_s18 = smov [#allocation5]   ;;  %s298_s20 = smov [#allocation2]  }
   0x5   :  { %s33_s19 = sshll.u32 %s297_s18, 4  ;;  %s21_s21 = sshll.u32 %s298_s20, 4  ;;  %s34_s19 = int_to_ptr.vmem [resolvable:$true] %s33_s19  ;;  %s335_s21 = int_to_ptr.vmem [resolvable:$true] %s21_s21 }
   0x6   :  { %s155_s24 = scalar_lea.hbm %s434_s1, 256 }
   0x7   :  { %p156_p0 = scmp.ne.s32.totalorder %s434_s1, %s155_s24  ;;  %p159_p1 = scmp.lt.u32.totalorder %s155_s24, %s434_s1 }
   0x9   :  { %p161_p2 = pnand %p159_p1, %p156_p0 }
   0xb   :  { %164 = shalt.err (!%p161_p2)
}
   0xc   :  { %s165_s29 = scalar_lea.vmem %s34_s19, 256  ;;  %p170_p4 = scmp.lt.s32.totalorder %s34_s19, %s34_s19 }
   0xd   :  { %p166_p3 = scmp.ne.s32.totalorder %s34_s19, %s165_s29  ;;  %p171_p5 = scmp.lt.s32.totalorder %s165_s29, %s165_s29 }
   0xf   :  { %p172_p6 = por %p171_p5, %p170_p4 }
  0x11   :  { %p173_p7 = pnand %p172_p6, %p166_p3 }
  0x13   :  { %176 = shalt.err (!%p173_p7)
}
  0x14   :  { %s299_s30 = smov 128   ;;  %s300_s6 = smov 8  }
  0x15   :  { %39 = dma.hbm_to_vmem [thread:$0]  %s434_s1, 256, %s34_s19, [#allocation6], %s299_s30, %s299_s30, %s300_s6  }
  0x16   :  { %s177_s11 = scalar_lea.hbm %s433_s0, 256 }
  0x17   :  { %p178_p8 = scmp.ne.s32.totalorder %s433_s0, %s177_s11  ;;  %p181_p9 = scmp.lt.u32.totalorder %s177_s11, %s433_s0 }
  0x19   :  { %p183_p10 = pnand %p181_p9, %p178_p8 }
  0x1b   :  { %186 = shalt.err (!%p183_p10)
}
  0x1c   :  { %s187_s16 = scalar_lea.vmem %s335_s21, 256  ;;  %p192_p12 = scmp.lt.s32.totalorder %s335_s21, %s335_s21 }
  0x1d   :  { %p188_p11 = scmp.ne.s32.totalorder %s335_s21, %s187_s16  ;;  %p193_p13 = scmp.lt.s32.totalorder %s187_s16, %s187_s16 }
  0x1f   :  { %p194_p0 = por %p193_p13, %p192_p12 }
  0x21   :  { %p195_p1 = pnand %p194_p0, %p188_p11 }
  0x23   :  { %198 = shalt.err (!%p195_p1)
}
  0x24   :  { %27 = dma.hbm_to_vmem [thread:$0]  %s433_s0, 256, %s335_s21, [#allocation3], %s299_s30, %s299_s30, %s300_s6  }
  0x25   :  { %s301_s18 = smov [#allocation7]   ;;  %s302_s20 = smov [#allocation8]  }
  0x26   :  { %s45_s19 = sshll.u32 %s301_s18, 4  ;;  %s57_s22 = sshll.u32 %s302_s20, 4  ;;  %s46_s19 = int_to_ptr.vmem [resolvable:$true] %s45_s19  ;;  %s372_s22 = int_to_ptr.vmem [resolvable:$true] %s57_s22 }
  0x27   :  { %s199_s25 = scalar_lea.hbm %s435_s2, 256 }
  0x28   :  { %p200_p2 = scmp.ne.s32.totalorder %s435_s2, %s199_s25  ;;  %p203_p3 = scmp.lt.u32.totalorder %s199_s25, %s435_s2 }
  0x2a   :  { %p205_p4 = pnand %p203_p3, %p200_p2 }
  0x2c   :  { %208 = shalt.err (!%p205_p4)
}
  0x2d   :  { %s209_s0 = scalar_lea.vmem %s46_s19, 256  ;;  %p214_p6 = scmp.lt.s32.totalorder %s46_s19, %s46_s19 }
  0x2e   :  { %p210_p5 = scmp.ne.s32.totalorder %s46_s19, %s209_s0  ;;  %p215_p7 = scmp.lt.s32.totalorder %s209_s0, %s209_s0 }
  0x30   :  { %p216_p8 = por %p215_p7, %p214_p6 }
  0x32   :  { %p217_p9 = pnand %p216_p8, %p210_p5 }
  0x34   :  { %220 = shalt.err (!%p217_p9)
}
  0x35   :  { %51 = dma.hbm_to_vmem [thread:$0]  %s435_s2, 256, %s46_s19, [#allocation6], %s299_s30, %s299_s30, %s300_s6  }
  0x36   :  { %s221_s10 = scalar_lea.hbm %s436_s3, 256 }
  0x37   :  { %p222_p10 = scmp.ne.s32.totalorder %s436_s3, %s221_s10  ;;  %p225_p11 = scmp.lt.u32.totalorder %s221_s10, %s436_s3 }
  0x39   :  { %p227_p12 = pnand %p225_p11, %p222_p10 }
  0x3b   :  { %230 = shalt.err (!%p227_p12)
}
  0x3c   :  { %s231_s15 = scalar_lea.vmem %s372_s22, 256  ;;  %p236_p0 = scmp.lt.s32.totalorder %s372_s22, %s372_s22 }
  0x3d   :  { %p232_p13 = scmp.ne.s32.totalorder %s372_s22, %s231_s15  ;;  %p237_p1 = scmp.lt.s32.totalorder %s231_s15, %s231_s15 }
  0x3f   :  { %p238_p2 = por %p237_p1, %p236_p0 }
  0x41   :  { %p239_p3 = pnand %p238_p2, %p232_p13 }
  0x43   :  { %242 = shalt.err (!%p239_p3)
}
  0x44   :  { %63 = dma.hbm_to_vmem [thread:$0]  %s436_s3, 256, %s372_s22, [#allocation9], %s299_s30, %s299_s30, %s300_s6  }
  0x45   :  { %287 = dma.done.wait [#allocation3], 256  }
  0x46   :  { %288 = vsyncadd [#allocation3], 4294967040 }
  0x47   :  { %289 = dma.done.wait [#allocation6], 512  }
  0x48   :  { %290 = vsyncadd [#allocation6], 4294966784 }
  0x49   :  { %291 = dma.done.wait [#allocation9], 256  }
  0x4a   :  { %292 = vsyncadd [#allocation9], 4294967040  ;;  %v78_v0 = vld [vmem:[#allocation5] sm:$0xff]  ;;  %v79_v1 = vld [vmem:[#allocation5 + $0x8] sm:$0xff]  ;;  %s303_s3 = smov [#allocation11]  }
  0x4b   :  { %v84_v2 = vsub.f32 0.0, %v78_v0  ;;  %v82_v3 = vld [vmem:[#allocation8] sm:$0xff]  ;;  %v83_v4 = vld [vmem:[#allocation8 + $0x8] sm:$0xff]  ;;  %v85_v5 = vsub.f32 0.0, %v79_v1  ;;  %v76_v10 = vld [vmem:[#allocation2] sm:$0xff]  ;;  %s128_s30 = sshll.u32 %s303_s3, 4  ;;  %s129_s30 = int_to_ptr.vmem [resolvable:$true] %s128_s30 }
  0x4c   :  { %v102_v7 = vceil.f32 %v82_v3  ;;  %vm100_vm0 = vcmp.lt.f32.partialorder %v82_v3, 0.0  ;;  %vm101_vm1 = vcmp.lt.f32.partialorder %v83_v4, 0.0  ;;  %v103_v9 = vceil.f32 %v83_v4  ;;  %v80_v11 = vld [vmem:[#allocation7] sm:$0xff]  ;;  %v77_v14 = vld [vmem:[#allocation2 + $0x8] sm:$0xff]  ;;  %s243_s6 = scalar_lea.vmem %s129_s30, 128  ;;  %p248_p5 = scmp.lt.s32.totalorder %s129_s30, %s129_s30 }
  0x4d   :  { %v86_v6 = vmul.f32 1.442695, %v84_v2  ;;  %v88_v8 = vmul.f32 1.442695, %v85_v5  ;;  %v104_v12 = vfloor.f32 %v82_v3  ;;  %v105_v13 = vfloor.f32 %v83_v4  ;;  %v81_v15 = vld [vmem:[#allocation7 + $0x8] sm:$0xff]  ;;  %p244_p4 = scmp.ne.s32.totalorder %s129_s30, %s243_s6  ;;  %p249_p6 = scmp.lt.s32.totalorder %s243_s6, %s243_s6 }
  0x4e   :  { %v90_v18 = vsub.f32 %v76_v10, %v80_v11  ;;  %v91_v20 = vsub.f32 %v77_v14, %v81_v15 }
  0x4f   :  { %151 = vpow2.f32 %v86_v6  ;;  %v106_v16 = vsel %vm100_vm0, %v102_v7, %v104_v12  ;;  %v107_v17 = vsel %vm101_vm1, %v103_v9, %v105_v13  ;;  %p250_p7 = por %p249_p6, %p248_p5 }
  0x50   :  { %153 = vpow2.f32 %v88_v8  ;;  %v110_v19 = vadd.f32 %v107_v17, %v106_v16 }
  0x51   :  { %p251_p8 = pnand %p250_p7, %p244_p4 }
  0x52   :  { %111 = vst [vmem:[#allocation11] sm:$0xff] %v110_v19 }
  0x53   :  { %254 = shalt.err (!%p251_p8)
}
  0x54   :  { %s255_s18 = scalar_lea.hbm %s438_s5, 128 }
  0x55   :  { %p256_p9 = scmp.ne.s32.totalorder %s438_s5, %s255_s18  ;;  %p259_p10 = scmp.lt.u32.totalorder %s255_s18, %s438_s5 }
  0x57   :  { %p261_p11 = pnand %p259_p10, %p256_p9 }
  0x59   :  { %264 = shalt.err (!%p261_p11)
}
  0x5a   :  { %131 = dma.vmem_to_hbm [thread:$0]  %s129_s30, 128, %s438_s5, [#allocation12]   ;;  %v92_v21 = vand.u32 2147483647, %v90_v18  ;;  %v93_v22 = vand.u32 2147483647, %v91_v20  ;;  %v152_v23 = vpop.eup %151 }
  0x5b   :  { %v154_v24 = vpop.eup %153  ;;  %s304_s26 = smov [#allocation10]  }
  0x5c   :  { %v94_v25 = vmul.f32 %v152_v23, %v92_v21  ;;  %v95_v26 = vmul.f32 %v154_v24, %v93_v22  ;;  %s118_s27 = sshll.u32 %s304_s26, 4  ;;  %s119_s27 = int_to_ptr.vmem [resolvable:$true] %s118_s27 }
  0x5d   :  { %s265_s28 = scalar_lea.vmem %s119_s27, 128  ;;  %p270_p13 = scmp.lt.s32.totalorder %s119_s27, %s119_s27 }
  0x5e   :  { %v96_v27 = vadd.f32 %v94_v25, %v78_v0  ;;  %v97_v28 = vadd.f32 %v95_v26, %v79_v1  ;;  %p266_p12 = scmp.ne.s32.totalorder %s119_s27, %s265_s28  ;;  %p271_p0 = scmp.lt.s32.totalorder %s265_s28, %s265_s28 }
  0x60   :  { %v98_v29 = vmul.f32 %v96_v27, %v82_v3  ;;  %v99_v30 = vmul.f32 %v97_v28, %v83_v4  ;;  %p272_p1 = por %p271_p0, %p270_p13 }
  0x62   :  { %v108_v31 = vadd.f32 %v99_v30, %v98_v29  ;;  %p273_p2 = pnand %p272_p1, %p266_p12 }
  0x64   :  { %109 = vst [vmem:[#allocation10] sm:$0xff] %v108_v31 }
  0x65   :  { %276 = shalt.err (!%p273_p2)
}
  0x66   :  { %s277_s0 = scalar_lea.hbm %s437_s4, 128 }
  0x67   :  { %p278_p3 = scmp.ne.s32.totalorder %s437_s4, %s277_s0  ;;  %p281_p4 = scmp.lt.u32.totalorder %s277_s0, %s437_s4 }
  0x69   :  { %p283_p5 = pnand %p281_p4, %p278_p3 }
  0x6b   :  { %286 = shalt.err (!%p283_p5)
}
  0x6c   :  { %121 = dma.vmem_to_hbm [thread:$0]  %s119_s27, 128, %s437_s4, [#allocation4]  }
  0x6d   :  { %293 = dma.done.wait [#allocation4], 128  }
  0x6e   :  { %294 = vsyncadd [#allocation4], 4294967168 }
  0x6f   :  { %295 = dma.done.wait [#allocation12], 128  }
  0x70   :  { %296 = vsyncadd [#allocation12], 4294967168 }
  0x71   :  { %138 = vsyncpa [#allocation3], 1 }
  0x72   :  { %139 = vsyncpa [#allocation6], 1 }
  0x73   :  { %140 = vsyncpa [#allocation9], 1 }
  0x74   :  { %141 = vsyncpa [#allocation4], 1 }
  0x75   :  { %142 = vsyncpa [#allocation12], 1 }

</bundles_post_ra>
